<compile_context>
chip_gen: v7x
topology: tpu7x:2x2x1
jax: 0.10.0
libtpu: 0.0.40
codegen_flags: <defaults>
</compile_context>

<pallas_src>
import functools

import jax
import jax.numpy as jnp
from jax.experimental import pallas as pl
from jax.experimental.pallas import tpu as pltpu


def _round_up(x, m):
    return ((x + m - 1) // m) * m


def _fc_disc_kernel(x_ref, w1_ref, b1_ref, w2_ref, b2_ref, o_ref):
    # First matmul: bf16 x bf16 -> f32 accumulation on the MXU.
    h = jnp.dot(x_ref[...], w1_ref[...], preferred_element_type=jnp.float32)
    h = jnp.maximum(h + b1_ref[0, :], 0.0)
    # Second (tiny) matmul kept in f32 for accuracy; output lane dim is 128-dense.
    out = jnp.dot(h, w2_ref[...], preferred_element_type=jnp.float32)
    o_ref[...] = (out + b2_ref[0, :]).astype(o_ref.dtype)


@functools.partial(jax.jit, static_argnames=("tm",))
def fc_discriminator_forward(x, w1, b1, w2, b2, *, tm=512):
    """x: any shape whose flattened trailing dims == fc_in. Returns (B, n_langs) f32."""
    fc_in, hidden = w1.shape
    n_langs = w2.shape[1]

    # x.view(-1, fc_in)
    x2d = x.reshape(-1, fc_in)
    b = x2d.shape[0]

    # Lane-dense output: zero-pad W2 columns / b2 up to a multiple of 128.
    n_pad = _round_up(n_langs, 128)
    w2p = jnp.zeros((hidden, n_pad), jnp.float32).at[:, :n_langs].set(
        w2.astype(jnp.float32))
    b2p = jnp.zeros((1, n_pad), jnp.float32).at[0, :n_langs].set(
        b2.astype(jnp.float32))

    # Streamed operands in bf16 (weights stay VMEM-resident across the grid).
    x_bf = x2d.astype(jnp.bfloat16)
    w1_bf = w1.astype(jnp.bfloat16)
    b1_2d = b1.reshape(1, hidden).astype(jnp.float32)

    # Big batch tile, clamped for small batches; no jnp.pad — ragged last tile.
    tm_eff = min(tm, _round_up(b, 8))
    grid = pl.cdiv(b, tm_eff)

    flops = 2 * b * fc_in * hidden + 2 * b * hidden * n_pad
    bytes_accessed = (b * fc_in * 2            # x (bf16)
                      + fc_in * hidden * 2     # W1 (bf16)
                      + hidden * n_pad * 4     # W2 (f32)
                      + (hidden + n_pad) * 4   # biases
                      + b * n_pad * 4)         # output

    out = pl.pallas_call(
        _fc_disc_kernel,
        out_shape=jax.ShapeDtypeStruct((b, n_pad), jnp.float32),
        grid_spec=pltpu.PrefetchScalarGridSpec(
            num_scalar_prefetch=0,
            grid=(grid,),
            in_specs=[
                pl.BlockSpec((tm_eff, fc_in), lambda i: (i, 0)),    # x tile (streamed)
                pl.BlockSpec((fc_in, hidden), lambda i: (0, 0)),    # W1 (resident)
                pl.BlockSpec((1, hidden), lambda i: (0, 0)),        # b1
                pl.BlockSpec((hidden, n_pad), lambda i: (0, 0)),    # W2 padded (resident)
                pl.BlockSpec((1, n_pad), lambda i: (0, 0)),         # b2 padded
            ],
            out_specs=pl.BlockSpec((tm_eff, n_pad), lambda i: (i, 0)),
        ),
        compiler_params=pltpu.CompilerParams(
            dimension_semantics=("parallel",),
        ),
        cost_estimate=pl.CostEstimate(
            flops=int(flops), transcendentals=0, bytes_accessed=int(bytes_accessed)),
    )(x_bf, w1_bf, b1_2d, w2p, b2p)

    # Drop the zero-padded output columns.
    return out[:, :n_langs]


def init_params(key, seq_len, input_dim, n_langs, hidden=256):
    """Deterministic synthetic init mimicking nn.Linear's U(-1/sqrt(fan_in), +)."""
    fc_in = seq_len * input_dim
    k1, k2, k3, k4 = jax.random.split(key, 4)
    bound1 = 1.0 / jnp.sqrt(fc_in)
    bound2 = 1.0 / jnp.sqrt(hidden)
    w1 = jax.random.uniform(k1, (fc_in, hidden), jnp.float32, -bound1, bound1)
    b1 = jax.random.uniform(k2, (hidden,), jnp.float32, -bound1, bound1)
    w2 = jax.random.uniform(k3, (hidden, n_langs), jnp.float32, -bound2, bound2)
    b2 = jax.random.uniform(k4, (n_langs,), jnp.float32, -bound2, bound2)
    return w1, b1, w2, b2


def _ref_forward(x, w1, b1, w2, b2):
    fc_in = w1.shape[0]
    x2d = x.reshape(-1, fc_in)
    return jnp.maximum(x2d @ w1 + b1, 0.0) @ w2 + b2


if __name__ == "__main__":
    # Small shapes consistent with the module: seq_len=8, input_dim=32 -> fc_in=256
    seq_len, input_dim, n_langs = 8, 32, 4
    batch = 2

    key = jax.random.PRNGKey(0)
    kx, kp = jax.random.split(key)
    x = jax.random.normal(kx, (batch, seq_len, input_dim), jnp.float32)
    w1, b1, w2, b2 = init_params(kp, seq_len, input_dim, n_langs)

    out = fc_discriminator_forward(x, w1, b1, w2, b2)
    out = jax.block_until_ready(out)

    ref = _ref_forward(x, w1, b1, w2, b2)
    assert out.shape == (batch, n_langs)
    # bf16 streaming of x/W1 (f32 accumulation) -> relaxed tolerance vs f32 reference.
    assert jnp.allclose(out, ref, atol=3e-2, rtol=3e-2), (
        float(jnp.max(jnp.abs(out - ref))))

    # Exercise multi-step grid + ragged last tile (20 rows, tm=16 -> grid of 2).
    x_big = jax.random.normal(jax.random.PRNGKey(1), (20, seq_len, input_dim),
                              jnp.float32)
    out_big = jax.block_until_ready(
        fc_discriminator_forward(x_big, w1, b1, w2, b2, tm=16))
    ref_big = _ref_forward(x_big, w1, b1, w2, b2)
    assert out_big.shape == (20, n_langs)
    assert jnp.allclose(out_big, ref_big, atol=3e-2, rtol=3e-2), (
        float(jnp.max(jnp.abs(out_big - ref_big))))

    print("KERNEL_OK")
</pallas_src>

<mosaic_0001>
module attributes {stable_mosaic.version = 11 : i64} {
  func.func @_fc_disc_kernel(%arg0: i32, %arg1: memref<8x256xbf16, #tpu.memory_space<vmem>>, %arg2: memref<256x256xbf16, #tpu.memory_space<vmem>>, %arg3: memref<1x256xf32, #tpu.memory_space<vmem>>, %arg4: memref<256x128xf32, #tpu.memory_space<vmem>>, %arg5: memref<1x128xf32, #tpu.memory_space<vmem>>, %arg6: memref<8x128xf32, #tpu.memory_space<vmem>>) attributes {dimension_semantics = [#tpu.dimension_semantics<parallel>], iteration_bounds = array<i64: 1>, scalar_prefetch = 0 : i64, scratch_operands = 0 : i64, tpu.core_type = #tpu.core_type<tc>, window_params = [{transform_indices = @transform_0, window_bounds = array<i64: 8, 256>}, {pipeline_mode = #tpu.pipeline_mode<synchronous>, transform_indices = @transform_1, window_bounds = array<i64: 256, 256>}, {pipeline_mode = #tpu.pipeline_mode<synchronous>, transform_indices = @transform_2, window_bounds = array<i64: 1, 256>}, {pipeline_mode = #tpu.pipeline_mode<synchronous>, transform_indices = @transform_3, window_bounds = array<i64: 256, 128>}, {pipeline_mode = #tpu.pipeline_mode<synchronous>, transform_indices = @transform_4, window_bounds = array<i64: 1, 128>}, {transform_indices = @transform_5, window_bounds = array<i64: 8, 128>}]} {
    %c0 = arith.constant 0 : index
    %c0_0 = arith.constant 0 : index
    %0 = vector.load %arg1[%c0, %c0_0] : memref<8x256xbf16, #tpu.memory_space<vmem>>, vector<8x256xbf16>
    %c0_1 = arith.constant 0 : index
    %c0_2 = arith.constant 0 : index
    %1 = vector.load %arg2[%c0_1, %c0_2] : memref<256x256xbf16, #tpu.memory_space<vmem>>, vector<256x256xbf16>
    %cst = arith.constant dense<0.000000e+00> : vector<8x256xf32>
    %2 = tpu.matmul %0, %1, %cst {dimension_numbers = #tpu.dot_dimension_numbers<[1], [0], [0], [1], [0, 0, 1, 1], [], []>} : vector<8x256xbf16>, vector<256x256xbf16>, vector<8x256xf32> -> vector<8x256xf32>
    %c0_3 = arith.constant 0 : index
    %c0_4 = arith.constant 0 : index
    %3 = vector.load %arg3[%c0_3, %c0_4] : memref<1x256xf32, #tpu.memory_space<vmem>>, vector<1x256xf32>
    %4 = vector.shape_cast %3 : vector<1x256xf32> to vector<256xf32>
    %5 = vector.shape_cast %4 : vector<256xf32> to vector<1x256xf32>
    %6 = vector.broadcast %5 : vector<1x256xf32> to vector<8x256xf32>
    %7 = arith.addf %2, %6 : vector<8x256xf32>
    %cst_5 = arith.constant 0.000000e+00 : f32
    %8 = vector.broadcast %cst_5 : f32 to vector<8x256xf32>
    %9 = arith.maximumf %7, %8 : vector<8x256xf32>
    %c0_6 = arith.constant 0 : index
    %c0_7 = arith.constant 0 : index
    %10 = vector.load %arg4[%c0_6, %c0_7] : memref<256x128xf32, #tpu.memory_space<vmem>>, vector<256x128xf32>
    %cst_8 = arith.constant dense<0.000000e+00> : vector<8x128xf32>
    %11 = tpu.matmul %9, %10, %cst_8 {dimension_numbers = #tpu.dot_dimension_numbers<[1], [0], [0], [1], [0, 0, 1, 1], [], []>} : vector<8x256xf32>, vector<256x128xf32>, vector<8x128xf32> -> vector<8x128xf32>
    %c0_9 = arith.constant 0 : index
    %c0_10 = arith.constant 0 : index
    %12 = vector.load %arg5[%c0_9, %c0_10] : memref<1x128xf32, #tpu.memory_space<vmem>>, vector<1x128xf32>
    %13 = vector.shape_cast %12 : vector<1x128xf32> to vector<128xf32>
    %14 = vector.shape_cast %13 : vector<128xf32> to vector<1x128xf32>
    %15 = vector.broadcast %14 : vector<1x128xf32> to vector<8x128xf32>
    %16 = arith.addf %11, %15 : vector<8x128xf32>
    %c0_11 = arith.constant 0 : index
    %c0_12 = arith.constant 0 : index
    %17 = vector.load %arg6[%c0_11, %c0_12] : memref<8x128xf32, #tpu.memory_space<vmem>>, vector<8x128xf32>
    tpu.vector_store %arg6[%c0_11, %c0_12], %16 {strides = array<i32>} : memref<8x128xf32, #tpu.memory_space<vmem>>, vector<8x128xf32>,
    return
  }
  func.func @transform_0(%arg0: i32) -> (i32, i32) {
    %c0_i32 = arith.constant 0 : i32
    %c0_i32_0 = arith.constant 0 : i32
    return %arg0, %c0_i32 : i32, i32
  }
  func.func @transform_1(%arg0: i32) -> (i32, i32) {
    %c0_i32 = arith.constant 0 : i32
    %c0_i32_0 = arith.constant 0 : i32
    %c0_i32_1 = arith.constant 0 : i32
    return %c0_i32, %c0_i32_0 : i32, i32
  }
  func.func @transform_2(%arg0: i32) -> (i32, i32) {
    %c0_i32 = arith.constant 0 : i32
    %c0_i32_0 = arith.constant 0 : i32
    %c0_i32_1 = arith.constant 0 : i32
    return %c0_i32, %c0_i32_0 : i32, i32
  }
  func.func @transform_3(%arg0: i32) -> (i32, i32) {
    %c0_i32 = arith.constant 0 : i32
    %c0_i32_0 = arith.constant 0 : i32
    %c0_i32_1 = arith.constant 0 : i32
    return %c0_i32, %c0_i32_0 : i32, i32
  }
  func.func @transform_4(%arg0: i32) -> (i32, i32) {
    %c0_i32 = arith.constant 0 : i32
    %c0_i32_0 = arith.constant 0 : i32
    %c0_i32_1 = arith.constant 0 : i32
    return %c0_i32, %c0_i32_0 : i32, i32
  }
  func.func @transform_5(%arg0: i32) -> (i32, i32) {
    %c0_i32 = arith.constant 0 : i32
    %c0_i32_0 = arith.constant 0 : i32
    return %arg0, %c0_i32 : i32, i32
  }
}

</mosaic_0001>

<bundles_post_ra>
// kernel: fc_discriminator_forward.1
= control target key start
LH: loop header
LB: loop body
LE: loop exit
PB: predicated region body
PF: predicated region fallthrough
CT: control target
= control target key end

     0   :  { %10 = vsyncpa [#allocation3], 0  ;;  %v59_v9 = vlaneseq  ;;  %v612_v10 = vmov 1966171168   ;;  %s887_s0 = inlined_call_operand.vmem [shape: bf16[2,256], index: 0, kind: input, shape index: {}]   ;;  %s888_s1 = inlined_call_operand.vmem [shape: bf16[256,256], index: 1, kind: input, shape index: {}]   ;;  %s889_s2 = inlined_call_operand.vmem [shape: f32[1,256], index: 2, kind: input, shape index: {}]   ;;  %s890_s3 = inlined_call_operand.vmem [shape: f32[256,128], index: 3, kind: input, shape index: {}]   ;;  %s891_s4 = inlined_call_operand.vmem [shape: f32[1,128], index: 4, kind: input, shape index: {}]   ;;  %s892_s5 = inlined_call_operand.hbm [shape: f32[2,128], index: 5, kind: output, shape index: {}]  }
   0x1   :  { %v540_v0 = vld [vmem:[%s888_s1 + $0x4] ss:$8 sps:$4 sm:$0xff]   ;;  %v542_v1 = vld [vmem:[%s888_s1] ss:$8 sps:$4 sm:$0xff]   ;;  %v543_v2 = vld [vmem:[%s888_s1 + $0x14] ss:$8 sps:$4 sm:$0xff]   ;;  %v76_v11 = vunpack.c.l.s4 %v612_v10 }
   0x2   :  { %267 = vmatprep.subr.bf16.mxu0 %v540_v0  ;;  %v545_v3 = vld [vmem:[%s888_s1 + $0x10] ss:$8 sps:$4 sm:$0xff]   ;;  %v546_v4 = vld [vmem:[%s888_s1 + $0x24] ss:$8 sps:$4 sm:$0xff]   ;;  %v548_v5 = vld [vmem:[%s888_s1 + $0x20] ss:$8 sps:$4 sm:$0xff]  }
   0x3   :  { %268 = vmatpush1.bf16.msra.mxu0 %v542_v1  ;;  %v549_v6 = vld [vmem:[%s888_s1 + $0x34] ss:$8 sps:$4 sm:$0xff]   ;;  %v551_v7 = vld [vmem:[%s888_s1 + $0x30] ss:$8 sps:$4 sm:$0xff]   ;;  %v552_v8 = vld [vmem:[%s888_s1 + $0x44] ss:$8 sps:$4 sm:$0xff]   ;;  %v77_v15 = vunpack.c.0.s8 %v76_v11 }
   0x4   :  { %269 = vmatprep.subr.bf16.mxu0 %v543_v2  ;;  %v554_v12 = vld [vmem:[%s888_s1 + $0x40] ss:$8 sps:$4 sm:$0xff]   ;;  %v555_v13 = vld [vmem:[%s888_s1 + $0x54] ss:$8 sps:$4 sm:$0xff]   ;;  %v679_v14 = vshrl.u32 %v59_v9, 7 }
   0x5   :  { %v557_v16 = vld [vmem:[%s888_s1 + $0x50] ss:$8 sps:$4 sm:$0xff]   ;;  %v558_v17 = vld [vmem:[%s888_s1 + $0x64] ss:$8 sps:$4 sm:$0xff]   ;;  %v21_v18 = vld [vmem:[%s887_s0] sm:$0x3] }
   0x6   :  { %v691_v19 = vsub.s32 %v77_v15, %v679_v14  ;;  %v560_v20 = vld [vmem:[%s888_s1 + $0x60] ss:$8 sps:$4 sm:$0xff]   ;;  %v23_v22 = vld [vmem:[%s887_s0 + $0x4] sm:$0x3]  ;;  %v24_v23 = vld [vmem:[%s887_s0 + $0x6] sm:$0x3] }
   0x7   :  { %270 = vmatpush1.bf16.msra.mxu0 %v545_v3  ;;  %v22_v21 = vld [vmem:[%s887_s0 + $0x2] sm:$0x3]  ;;  %v561_v24 = vld [vmem:[%s888_s1 + $0x74] ss:$8 sps:$4 sm:$0xff]   ;;  %v74_v26 = vcombine.low %v23_v22, %v24_v23  ;;  %v327_v28 = vld [vmem:[%s890_s3 + $0x88] sm:$0xff] }
   0x8   :  { %271 = vmatprep.subr.bf16.mxu0 %v546_v4  ;;  %v73_v25 = vcombine.low %v21_v18, %v22_v21  ;;  %v326_v27 = vld [vmem:[%s890_s3 + $0x80] sm:$0xff]  ;;  %v311_v31 = vld [vmem:[%s890_s3 + $0x8] sm:$0xff]  ;;  %v328_v32 = vld [vmem:[%s890_s3 + $0x90] sm:$0xff] }
   0x9   :  { %v310_v29 = vld [vmem:[%s890_s3] sm:$0xff]  ;;  %v504_v30 = vpack.c.bf16 %v327_v28, %v326_v27  ;;  %v329_v33 = vld [vmem:[%s890_s3 + $0x98] sm:$0xff]  ;;  %v730_v35 = vrot.slane %v74_v26, %v691_v19  ;;  %v312_v38 = vld [vmem:[%s890_s3 + $0x10] sm:$0xff] }
   0xa   :  { %v727_v34 = vrot.slane %v73_v25, %v691_v19  ;;  %v506_v36 = vpack.c.bf16 %v311_v31, %v310_v29  ;;  %v508_v37 = vpack.c.bf16 %v329_v33, %v328_v32  ;;  %v313_v39 = vld [vmem:[%s890_s3 + $0x18] sm:$0xff]  ;;  %v330_v40 = vld [vmem:[%s890_s3 + $0xa0] sm:$0xff]  ;;  %v331_v41 = vld [vmem:[%s890_s3 + $0xa8] sm:$0xff] }
   0xb   :  { %272 = vmatpush1.bf16.msra.mxu0 %v548_v5  ;;  %505 = vmatprep.subr.bf16.mxu1 %v504_v30  ;;  %v510_v43 = vpack.c.bf16 %v313_v39, %v312_v38  ;;  %v563_v44 = vld [vmem:[%s888_s1 + $0x70] ss:$8 sps:$4 sm:$0xff]   ;;  %v512_v45 = vpack.c.bf16 %v331_v41, %v330_v40  ;;  %v314_v46 = vld [vmem:[%s890_s3 + $0x20] sm:$0xff]  ;;  %v315_v47 = vld [vmem:[%s890_s3 + $0x28] sm:$0xff] }
   0xc   :  { %273 = vmatprep.subr.bf16.mxu0 %v549_v6  ;;  %v90_v42 = vcombine.high %v727_v34, %v730_v35  ;;  %507 = vmatpush3.bf16.msra.mxu1 %v506_v36  ;;  %v564_v48 = vld [vmem:[%s888_s1 + $0x84] ss:$8 sps:$4 sm:$0xff]   ;;  %v332_v50 = vld [vmem:[%s890_s3 + $0xb0] sm:$0xff]  ;;  %v333_v51 = vld [vmem:[%s890_s3 + $0xb8] sm:$0xff]  ;;  %v514_v52 = vpack.c.bf16 %v315_v47, %v314_v46 }
   0xd   :  { %509 = vmatprep.subr.bf16.mxu1 %v508_v37  ;;  %v566_v53 = vld [vmem:[%s888_s1 + $0x80] ss:$8 sps:$4 sm:$0xff]   ;;  %v516_v54 = vpack.c.bf16 %v333_v51, %v332_v50  ;;  %v316_v55 = vld [vmem:[%s890_s3 + $0x30] sm:$0xff]  ;;  %v317_v56 = vld [vmem:[%s890_s3 + $0x38] sm:$0xff]  ;;  %v65_v37 = vsub.s32 1, %v679_v14 }
   0xe   :  { %v104_v49 = vrot.slane %v90_v42, %v691_v19  ;;  %v567_v57 = vld [vmem:[%s888_s1 + $0x94] ss:$8 sps:$4 sm:$0xff]   ;;  %v334_v58 = vld [vmem:[%s890_s3 + $0xc0] sm:$0xff]  ;;  %v335_v59 = vld [vmem:[%s890_s3 + $0xc8] sm:$0xff]  ;;  %v518_v60 = vpack.c.bf16 %v317_v56, %v316_v55 }
   0xf   :  { %274 = vmatpush1.bf16.msra.mxu0 %v551_v7  ;;  %v569_v61 = vld [vmem:[%s888_s1 + $0x90] ss:$8 sps:$4 sm:$0xff]   ;;  %v520_v62 = vpack.c.bf16 %v335_v59, %v334_v58  ;;  %v318_v63 = vld [vmem:[%s890_s3 + $0x40] sm:$0xff]  ;;  %v319_v0 = vld [vmem:[%s890_s3 + $0x48] sm:$0xff] }
  0x10   :  { %275 = vmatprep.subr.bf16.mxu0 %v552_v8  ;;  %299 = vmatprep.mubr.bf16.mxu0 %v104_v49  ;;  %v570_v1 = vld [vmem:[%s888_s1 + $0xa4] ss:$8 sps:$4 sm:$0xff]   ;;  %v336_v2 = vld [vmem:[%s890_s3 + $0xd0] sm:$0xff]  ;;  %v337_v3 = vld [vmem:[%s890_s3 + $0xd8] sm:$0xff]  ;;  %v522_v4 = vpack.c.bf16 %v319_v0, %v318_v63 }
  0x11   :  { %511 = vmatpush3.bf16.msra.mxu1 %v510_v43  ;;  %v572_v5 = vld [vmem:[%s888_s1 + $0xa0] ss:$8 sps:$4 sm:$0xff]   ;;  %v524_v6 = vpack.c.bf16 %v337_v3, %v336_v2  ;;  %v320_v7 = vld [vmem:[%s890_s3 + $0x50] sm:$0xff]  ;;  %v321_v8 = vld [vmem:[%s890_s3 + $0x58] sm:$0xff] }
  0x12   :  { %513 = vmatprep.subr.bf16.mxu1 %v512_v45  ;;  %v573_v9 = vld [vmem:[%s888_s1 + $0xb4] ss:$8 sps:$4 sm:$0xff]   ;;  %v338_v10 = vld [vmem:[%s890_s3 + $0xe0] sm:$0xff]  ;;  %v339_v11 = vld [vmem:[%s890_s3 + $0xe8] sm:$0xff] }
  0x13   :  { %276 = vmatpush1.bf16.msra.mxu0 %v554_v12  ;;  %v526_v12 = vpack.c.bf16 %v321_v8, %v320_v7  ;;  %v528_v15 = vpack.c.bf16 %v339_v11, %v338_v10  ;;  %v579_v18 = vld [vmem:[%s888_s1 + $0xd4] ss:$8 sps:$4 sm:$0xff]   ;;  %v582_v21 = vld [vmem:[%s888_s1 + $0xe4] ss:$8 sps:$4 sm:$0xff]   ;;  %v584_v22 = vld [vmem:[%s888_s1 + $0xe0] ss:$8 sps:$4 sm:$0xff]  }
  0x14   :  { %277 = vmatprep.subr.bf16.mxu0 %v555_v13  ;;  %v575_v13 = vld [vmem:[%s888_s1 + $0xb0] ss:$8 sps:$4 sm:$0xff]   ;;  %v585_v23 = vld [vmem:[%s888_s1 + $0xf4] ss:$8 sps:$4 sm:$0xff]   ;;  %v322_v27 = vld [vmem:[%s890_s3 + $0x60] sm:$0xff] }
  0x15   :  { %515 = vmatpush3.bf16.msra.mxu1 %v514_v52  ;;  %v587_v25 = vld [vmem:[%s888_s1 + $0xf0] ss:$8 sps:$4 sm:$0xff]   ;;  %v323_v28 = vld [vmem:[%s890_s3 + $0x68] sm:$0xff]  ;;  %v57_v36 = vld [vmem:[%s889_s2] sm:$0x3] }
  0x16   :  { %517 = vmatprep.subr.bf16.mxu1 %v516_v54  ;;  %v530_v29 = vpack.c.bf16 %v323_v28, %v322_v27  ;;  %v340_v30 = vld [vmem:[%s890_s3 + $0xf0] sm:$0xff]  ;;  %v325_v33 = vld [vmem:[%s890_s3 + $0x78] sm:$0xff]  ;;  %v66_v39 = vrot.slane %v57_v36, %v65_v37  ;;  %v468_v49 = vld [vmem:[%s891_s4] ss:$0 sm:$0xff] }
  0x17   :  { %278 = vmatpush1.bf16.msra.mxu0 %v557_v16  ;;  %v576_v16 = vld [vmem:[%s888_s1 + $0xc4] ss:$8 sps:$4 sm:$0xff]   ;;  %v324_v32 = vld [vmem:[%s890_s3 + $0x70] sm:$0xff] }
  0x18   :  { %279 = vmatprep.subr.bf16.mxu0 %v558_v17  ;;  %v578_v17 = vld [vmem:[%s888_s1 + $0xc0] ss:$8 sps:$4 sm:$0xff]  }
  0x19   :  { %519 = vmatpush3.bf16.msra.mxu1 %v518_v60 }
  0x1a   :  { %521 = vmatprep.subr.bf16.mxu1 %v520_v62 }
  0x1b   :  { %280 = vmatpush1.bf16.msra.mxu0 %v560_v20  ;;  %v581_v20 = vld [vmem:[%s888_s1 + $0xd0] ss:$8 sps:$4 sm:$0xff]  }
  0x1c   :  { %281 = vmatprep.subr.bf16.mxu0 %v561_v24  ;;  %v89_v24 = vcombine.low %v727_v34, %v730_v35  ;;  %v534_v34 = vpack.c.bf16 %v325_v33, %v324_v32  ;;  %v61_v35 = vsub.s32 0, %v679_v14 }
  0x1d   :  { %523 = vmatpush3.bf16.msra.mxu1 %v522_v4 }
  0x1e   :  { %525 = vmatprep.subr.bf16.mxu1 %v524_v6  ;;  %v97_v26 = vrot.slane %v89_v24, %v691_v19  ;;  %v341_v19 = vld [vmem:[%s890_s3 + $0xf8] sm:$0xff]  ;;  %v62_v38 = vrot.slane %v57_v36, %v61_v35 }
  0x1f   :  { %282 = vmatpush1.bf16.msra.mxu0 %v563_v44  ;;  %v532_v31 = vpack.c.bf16 %v341_v19, %v340_v30 }
  0x20   :  { %283 = vmatprep.subr.bf16.mxu0 %v564_v48 }
  0x21   :  { %527 = vmatpush3.bf16.msra.mxu1 %v526_v12 }
  0x22   :  { %529 = vmatprep.subr.bf16.mxu1 %v528_v15 }
  0x23   :  { %284 = vmatpush1.bf16.msra.mxu0 %v566_v53 }
  0x24   :  { %285 = vmatprep.subr.bf16.mxu0 %v567_v57 }
  0x25   :  { %531 = vmatpush3.bf16.msra.mxu1 %v530_v29 }
  0x26   :  { %533 = vmatprep.subr.bf16.mxu1 %v532_v31 }
  0x27   :  { %286 = vmatpush1.bf16.msra.mxu0 %v569_v61 }
  0x28   :  { %287 = vmatprep.subr.bf16.mxu0 %v570_v1 }
  0x29   :  { %535 = vmatpush3.bf16.msra.mxu1 %v534_v34 }
  0x2b   :  { %288 = vmatpush1.bf16.msra.mxu0 %v572_v5 }
  0x2c   :  { %289 = vmatprep.subr.bf16.mxu0 %v573_v9 }
  0x2f   :  { %290 = vmatpush1.bf16.msra.mxu0 %v575_v13 }
  0x30   :  { %291 = vmatprep.subr.bf16.mxu0 %v576_v16 }
  0x33   :  { %292 = vmatpush1.bf16.msra.mxu0 %v578_v17 }
  0x34   :  { %293 = vmatprep.subr.bf16.mxu0 %v579_v18 }
  0x37   :  { %294 = vmatpush1.bf16.msra.mxu0 %v581_v20 }
  0x38   :  { %295 = vmatprep.subr.bf16.mxu0 %v582_v21 }
  0x3b   :  { %296 = vmatpush1.bf16.msra.mxu0 %v584_v22 }
  0x3c   :  { %297 = vmatprep.subr.bf16.mxu0 %v585_v23 }
  0x3f   :  { %298 = vmatpush1.bf16.msra.mxu0 %v587_v25 }
  0x42   :  { %300 = vmatmul.mubr.bf16.vlgmr.msra.gmra.mrb[0].mxu0 %v97_v26 }
 0x115   :  { %v301_v40 = vpop.f32.mrb[0].mxu0 }
 0x116   :  { %v302_v41 = vadd.f32 %v301_v40, %v62_v38  ;;  %v303_v42 = vpop.f32.mrb[1].mxu0 }
 0x117   :  { %v305_v43 = vpop.f32.mrb[2].mxu0  ;;  %v304_v44 = vadd.f32 %v303_v42, %v66_v39 }
 0x118   :  { %v306_v45 = vpop.f32.mrb[3].mxu0  ;;  %v308_v47 = vmax.f32 %v302_v41, 0.0 }
 0x119   :  { %v309_v46 = vmax.f32 %v304_v44, 0.0 }
 0x11b   :  { %413 = vmatprep.mubr.f32.mxu1 %v309_v46 }
 0x11c   :  { %414 = vmatmul.mubr.f32.vlgmr.msra.gmra.mrb[0].mxu1 %v308_v47 }
 0x1ef   :  { %v501_v48 = vpop.f32.mrb[0].mxu1 }
 0x1f0   :  { %v502_v50 = vpop.f32.mrb[1].mxu1 }
 0x1f1   :  { %v503_v51 = vadd.f32 %v502_v50, %v501_v48 }
 0x1f3   :  { %v416_v14 = vadd.f32 %v503_v51, %v468_v49 }
 0x1f5   :  { %419 = vst [vmem:[#allocation2] sm:$0xff] %v416_v14 }
 0x1f6   :  { %424 = vsyncadd [#allocation3], 96  ;;  %s613_s2 = smov [#allocation2]  }
 0x1f7   :  { %s425_s27 = sshll.u32 %s613_s2, 4  ;;  %s426_s27 = int_to_ptr.vmem [resolvable:$true] %s425_s27 }
 0x1f8   :  { %s588_s28 = scalar_lea.vmem %s426_s27, 32  ;;  %s592_s29 = scalar_lea.vmem %s426_s27, 128 }
 0x1f9   :  { %p589_p0 = scmp.ne.s32.totalorder %s426_s27, %s588_s28  ;;  %p593_p1 = scmp.lt.s32.totalorder %s426_s27, %s426_s27 }
 0x1fa   :  { %p594_p2 = scmp.lt.s32.totalorder %s592_s29, %s588_s28 }
 0x1fc   :  { %p595_p3 = por %p594_p2, %p593_p1 }
 0x1fe   :  { %p596_p4 = pnand %p595_p3, %p589_p0 }
 0x200   :  { %599 = shalt.err (!%p596_p4)
}
 0x201   :  { %s600_s4 = scalar_lea.hbm %s892_s5, 32 }
 0x202   :  { %p601_p5 = scmp.ne.s32.totalorder %s892_s5, %s600_s4  ;;  %p604_p6 = scmp.lt.u32.totalorder %s600_s4, %s892_s5 }
 0x204   :  { %p606_p7 = pnand %p604_p6, %p601_p5 }
 0x206   :  { %609 = shalt.err (!%p606_p7)
}
 0x207   :  { %s614_s11 = smov 32   ;;  %s615_s0 = smov 2  }
 0x208   :  { %431 = dma.vmem_to_hbm [thread:$0]  %s426_s27, 32, %s892_s5, [#allocation3], %s614_s11, %s614_s11, %s615_s0  }
 0x209   :  { %610 = dma.done.wait [#allocation3], 128  }
 0x20a   :  { %611 = vsyncadd [#allocation3], 4294967168 }
 0x20b   :  { %435 = vsyncpa [#allocation3], 1 }

</bundles_post_ra>
